<compile_context>
chip_gen: v6e
topology: v6e:2x2x1
jax: 0.10.0
libtpu: 0.0.40
codegen_flags: <defaults>
</compile_context>

<pallas_src>
import functools
import math

import jax
import jax.numpy as jnp
from jax.experimental import pallas as pl
from jax.experimental.pallas import tpu as pltpu


def make_sinusoidal_weight(d_model: int, max_sequence_length: int,
                           dtype=jnp.float32) -> jnp.ndarray:
    """Deterministic buffer init, identical to the PyTorch __init__ (d_model even)."""
    position = jnp.arange(0, max_sequence_length, dtype=jnp.float32)[:, None]      # (L, 1)
    div_term = jnp.exp(
        jnp.arange(0, d_model, 2, dtype=jnp.float32) * (-math.log(10000.0) / d_model)
    )                                                                               # (D/2,)
    ang = position * div_term                                                       # (L, D/2)
    weight = jnp.zeros((max_sequence_length, d_model), dtype=jnp.float32)
    weight = weight.at[:, 0::2].set(jnp.sin(ang))
    weight = weight.at[:, 1::2].set(jnp.cos(ang))
    return weight[None, :, :].astype(dtype)                                         # (1, L, D)


def _pe_add_kernel(x_ref, pe_ref, o_ref):
    # Elementwise add on one tile (x and pe tiles have identical block shapes).
    o_ref[...] = (x_ref[...] + pe_ref[...]).astype(o_ref.dtype)


def sinusoidal_pe_forward(
    x: jnp.ndarray,
    weight: jnp.ndarray,
    *,
    target_block_bytes: int = 4 * 1024 * 1024,
    in_place: bool = False,
) -> jnp.ndarray:
    """x: (B, S, D); weight: (1, max_seq, D). Returns x + weight[:, :S]."""
    B, S, D = x.shape
    assert weight.ndim == 3 and weight.shape[0] == 1
    _, L, Dw = weight.shape
    assert Dw == D and L >= S
    # TODO(synk): position_ids gather path (x + weight[position_ids]) not implemented;
    # only the default `x + weight[:, :S]` path of the PyTorch forward.

    if weight.dtype != x.dtype:
        weight = weight.astype(x.dtype)           # one-time cast; halves PE traffic for bf16 models

    itemsize = x.dtype.itemsize
    sub = max(8, 32 // itemsize)                  # native sublane multiple: 8 f32, 16 bf16, 32 int8/fp8
    vmem_limit = 32 * 1024 * 1024                 # safe explicit limit on v5e/v6e (128 MiB) and v7x (64 MiB)
    io_alias = {0: 0} if in_place else {}

    # ---- choose a lane-dense 2-D (rows, cols) view of the per-batch (S, D) slab ----
    pad_elems = 0
    if D % 128 == 0:
        rows, cols = S, D
        x2 = x                                    # (B, rows, cols)
        pe_full = weight                          # (1, L, D): read unsliced in the tiled path
    else:
        flat = S * D
        pad_elems = (-flat) % 128
        flat_p = flat + pad_elems
        cols = 128
        while cols * 2 <= 4096 and flat_p % (cols * 2) == 0:
            cols *= 2
        rows = flat_p // cols
        if pad_elems == 0:
            x2 = x.reshape(B, rows, cols)         # free row-major reshape
            wflat = L * D
            if wflat % cols == 0:
                pe_full = weight.reshape(1, wflat // cols, cols)   # free reshape of full buffer
            else:
                pe_full = weight.reshape(1, wflat)[:, :flat].reshape(1, rows, cols)
        else:
            # Pad the flattened per-batch slab to a multiple of 128 so stores stay
            # unmasked and tiles stay bounded (replaces the old cols=flat fallback).
            x2 = jnp.pad(x.reshape(B, flat), ((0, 0), (0, pad_elems))).reshape(B, rows, cols)
            pe_full = jnp.pad(weight.reshape(L * D)[:flat], (0, pad_elems)).reshape(1, rows, cols)

    slab_bytes = rows * cols * itemsize

    # ---- decide: fold batches into each tile (small slabs) vs tile rows per batch ----
    use_batched = False
    k = 1
    if B > 1 and 2 * slab_bytes <= target_block_bytes:
        if B * slab_bytes <= target_block_bytes:
            k = B                                  # single full-extent tile -> always a legal block
            use_batched = True
        else:
            m = sub // math.gcd(rows, sub)         # smallest k with (k*rows) % sub == 0
            k_max = min(B, target_block_bytes // slab_bytes)
            k = (k_max // m) * m
            use_batched = k >= m and k >= 1

    if use_batched:
        # Fold batch into the row axis: one big lane-dense 2-D problem, PE slab
        # (tiled k times) stays resident via a constant index_map.
        x3 = x2.reshape(B * rows, cols)
        pe_t = jnp.tile(pe_full[0, :rows, :], (k, 1))          # (k*rows, cols), built once
        ts2 = k * rows
        n_tiles = pl.cdiv(B, k)
        out3 = pl.pallas_call(
            _pe_add_kernel,
            out_shape=jax.ShapeDtypeStruct((B * rows, cols), x.dtype),
            grid_spec=pltpu.PrefetchScalarGridSpec(
                num_scalar_prefetch=0,
                grid=(n_tiles,),
                in_specs=[
                    pl.BlockSpec((ts2, cols), lambda i: (i, 0)),       # x tile (k batches)
                    pl.BlockSpec((ts2, cols), lambda i: (0, 0)),       # resident tiled PE
                ],
                out_specs=pl.BlockSpec((ts2, cols), lambda i: (i, 0)),
            ),
            compiler_params=pltpu.CompilerParams(
                dimension_semantics=("parallel",),
                vmem_limit_bytes=vmem_limit,
            ),
            input_output_aliases=io_alias,
        )(x3, pe_t)
        out2 = out3.reshape(B, rows, cols)
    else:
        # ---- row-tile size: ~target_block_bytes per buffer, dtype-native sublane multiple ----
        ts = max(sub, target_block_bytes // (cols * itemsize))
        ts -= ts % sub
        if ts <= 0 or ts >= rows:
            ts = rows                              # single row-tile
        if ts % 8 != 0 and pe_full.shape[1] != ts:
            # ts == rows here; make the PE block span its full row extent so the
            # (8,128) constraint holds (tiny one-time S*D slice).
            pe_full = pe_full[:, :ts, :]
        n_row_tiles = pl.cdiv(rows, ts)
        out2 = pl.pallas_call(
            _pe_add_kernel,
            out_shape=jax.ShapeDtypeStruct((B, rows, cols), x.dtype),
            grid_spec=pltpu.PrefetchScalarGridSpec(
                num_scalar_prefetch=0,
                # batch innermost -> the PE block index (s) is constant across the
                # inner loop, so Pallas keeps the PE tile resident.
                grid=(n_row_tiles, B),
                in_specs=[
                    pl.BlockSpec((1, ts, cols), lambda s, b: (b, s, 0)),   # x tile
                    pl.BlockSpec((1, ts, cols), lambda s, b: (0, s, 0)),   # shared PE tile
                ],
                out_specs=pl.BlockSpec((1, ts, cols), lambda s, b: (b, s, 0)),
            ),
            compiler_params=pltpu.CompilerParams(
                dimension_semantics=("parallel", "parallel"),
                vmem_limit_bytes=vmem_limit,
            ),
            input_output_aliases=io_alias,
        )(x2, pe_full)

    # ---- undo the lane-dense view ----
    if D % 128 == 0:
        return out2
    if pad_elems == 0:
        return out2.reshape(B, S, D)
    return out2.reshape(B, rows * cols)[:, : S * D].reshape(B, S, D)


if __name__ == "__main__":
    key = jax.random.PRNGKey(0)
    k1, k2, k3, k4, k5, k6 = jax.random.split(key, 6)

    # --- Case 1: narrow d_model, tiny slabs -> batch-folded lane-dense path ---
    w1 = make_sinusoidal_weight(32, 64)
    x1 = jax.random.normal(k1, (2, 8, 32), dtype=jnp.float32)
    o1 = jax.block_until_ready(sinusoidal_pe_forward(x1, w1))
    assert o1.shape == (2, 8, 32)
    assert jnp.allclose(o1, x1 + w1[:, :8], atol=1e-6), "mismatch (case 1)"

    # --- Case 2: lane-aligned D, multiple row tiles + partial edge tile (tiny target forces ts=8) ---
    w2 = make_sinusoidal_weight(128, 64)
    x2 = jax.random.normal(k2, (2, 20, 128), dtype=jnp.float32)
    o2 = jax.block_until_ready(sinusoidal_pe_forward(x2, w2, target_block_bytes=8 * 128 * 4))
    assert o2.shape == (2, 20, 128)
    assert jnp.allclose(o2, x2 + w2[:, :20], atol=1e-6), "mismatch (case 2)"

    # --- Case 3: S*D not a multiple of 128 -> zero-padded lane-dense path ---
    w3 = make_sinusoidal_weight(24, 16)
    x3 = jax.random.normal(k3, (2, 5, 24), dtype=jnp.float32)
    o3 = jax.block_until_ready(sinusoidal_pe_forward(x3, w3))
    assert o3.shape == (2, 5, 24)
    assert jnp.allclose(o3, x3 + w3[:, :5], atol=1e-6), "mismatch (case 3)"

    # --- Case 4: bf16 input -> dtype-aware sublane rounding (ts multiple of 16) + PE cast to bf16 ---
    w4 = make_sinusoidal_weight(256, 64)
    x4 = jax.random.normal(k4, (2, 48, 256), dtype=jnp.float32).astype(jnp.bfloat16)
    o4 = jax.block_until_ready(sinusoidal_pe_forward(x4, w4, target_block_bytes=16 * 256 * 2))
    ref4 = x4 + w4.astype(jnp.bfloat16)[:, :48]
    assert o4.shape == (2, 48, 256)
    assert jnp.allclose(o4.astype(jnp.float32), ref4.astype(jnp.float32), atol=1e-2), "mismatch (case 4)"

    # --- Case 5: large-B / small slab -> batch-folded path with k < B (tiled resident PE) ---
    w5 = make_sinusoidal_weight(128, 32)
    x5 = jax.random.normal(k5, (16, 8, 128), dtype=jnp.float32)
    o5 = jax.block_until_ready(sinusoidal_pe_forward(x5, w5, target_block_bytes=4 * 8 * 128 * 4))
    assert o5.shape == (16, 8, 128)
    assert jnp.allclose(o5, x5 + w5[:, :8], atol=1e-6), "mismatch (case 5)"

    # --- Case 6: in-place aliasing (production mode) with donated input ---
    x6 = jax.random.normal(k6, (2, 20, 128), dtype=jnp.float32)
    ref6 = x6 + w2[:, :20]
    inplace_fwd = jax.jit(
        functools.partial(sinusoidal_pe_forward, target_block_bytes=8 * 128 * 4, in_place=True),
        donate_argnums=(0,),
    )
    o6 = jax.block_until_ready(inplace_fwd(x6, w2))
    assert o6.shape == (2, 20, 128)
    assert jnp.allclose(o6, ref6, atol=1e-6), "mismatch (case 6)"

    print("KERNEL_OK")
</pallas_src>

<mosaic_0001>
module attributes {stable_mosaic.version = 11 : i64} {
  func.func @_pe_add_kernel(%arg0: i32, %arg1: memref<2x256xf32, #tpu.memory_space<vmem>>, %arg2: memref<2x256xf32, #tpu.memory_space<vmem>>, %arg3: memref<2x256xf32, #tpu.memory_space<vmem>>) attributes {dimension_semantics = [#tpu.dimension_semantics<parallel>], iteration_bounds = array<i64: 1>, scalar_prefetch = 0 : i64, scratch_operands = 0 : i64, tpu.core_type = #tpu.core_type<tc>, window_params = [{transform_indices = @transform_0, window_bounds = array<i64: 2, 256>}, {pipeline_mode = #tpu.pipeline_mode<synchronous>, transform_indices = @transform_1, window_bounds = array<i64: 2, 256>}, {transform_indices = @transform_2, window_bounds = array<i64: 2, 256>}]} {
    %c0 = arith.constant 0 : index
    %c0_0 = arith.constant 0 : index
    %0 = vector.load %arg1[%c0, %c0_0] : memref<2x256xf32, #tpu.memory_space<vmem>>, vector<2x256xf32>
    %c0_1 = arith.constant 0 : index
    %c0_2 = arith.constant 0 : index
    %1 = vector.load %arg2[%c0_1, %c0_2] : memref<2x256xf32, #tpu.memory_space<vmem>>, vector<2x256xf32>
    %2 = arith.addf %0, %1 : vector<2x256xf32>
    %c0_3 = arith.constant 0 : index
    %c0_4 = arith.constant 0 : index
    %3 = vector.load %arg3[%c0_3, %c0_4] : memref<2x256xf32, #tpu.memory_space<vmem>>, vector<2x256xf32>
    tpu.vector_store %arg3[%c0_3, %c0_4], %2 {strides = array<i32>} : memref<2x256xf32, #tpu.memory_space<vmem>>, vector<2x256xf32>,
    return
  }
  func.func @transform_0(%arg0: i32) -> (i32, i32) {
    %c0_i32 = arith.constant 0 : i32
    %c0_i32_0 = arith.constant 0 : i32
    return %arg0, %c0_i32 : i32, i32
  }
  func.func @transform_1(%arg0: i32) -> (i32, i32) {
    %c0_i32 = arith.constant 0 : i32
    %c0_i32_0 = arith.constant 0 : i32
    %c0_i32_1 = arith.constant 0 : i32
    return %c0_i32, %c0_i32_0 : i32, i32
  }
  func.func @transform_2(%arg0: i32) -> (i32, i32) {
    %c0_i32 = arith.constant 0 : i32
    %c0_i32_0 = arith.constant 0 : i32
    return %arg0, %c0_i32 : i32, i32
  }
}

</mosaic_0001>

<bundles_post_ra>
// kernel: tpu_custom_call.1
= control target key start
LH: loop header
LB: loop body
LE: loop exit
PB: predicated region body
PF: predicated region fallthrough
CT: control target
= control target key end

     0   :  { %7 = vsyncpa [#allocation3], 0  ;;  %s152_s0 = inlined_call_operand.hbm [shape: f32[2,256], index: 0, kind: input, shape index: {}]   ;;  %s153_s1 = inlined_call_operand.hbm [shape: f32[2,256], index: 1, kind: input, shape index: {}]   ;;  %s154_s2 = inlined_call_operand.hbm [shape: f32[2,256], index: 2, kind: output, shape index: {}]  }
   0x1   :  { %8 = vsyncpa [#allocation6], 0 }
   0x2   :  { %9 = vsyncpa [#allocation4], 0  ;;  %s125_s9 = smov [#allocation2]   ;;  %s126_s11 = smov [#allocation5]  }
   0x3   :  { %s16_s10 = sshll.u32 %s125_s9, 4  ;;  %s26_s12 = sshll.u32 %s126_s11, 4  ;;  %s17_s10 = int_to_ptr.vmem [resolvable:$true] %s16_s10  ;;  %s27_s12 = int_to_ptr.vmem [resolvable:$true] %s26_s12 }
   0x4   :  { %s67_s13 = scalar_lea.vmem %s17_s10, 64  ;;  %p72_p1 = scmp.lt.s32.totalorder %s17_s10, %s17_s10 }
   0x5   :  { %p68_p0 = scmp.ne.s32.totalorder %s17_s10, %s67_s13  ;;  %p73_p2 = scmp.lt.s32.totalorder %s67_s13, %s67_s13 }
   0x7   :  { %p74_p3 = por %p73_p2, %p72_p1 }
   0x9   :  { %p75_p4 = pnand %p74_p3, %p68_p0 }
   0xb   :  { %78 = shalt.err (!%p75_p4)
}
   0xc   :  { %19 = dma.hbm_to_vmem [thread:$0]  %s152_s0, 64, %s17_s10, [#allocation3]  }
   0xd   :  { %s87_s16 = scalar_lea.vmem %s27_s12, 64  ;;  %p92_p6 = scmp.lt.s32.totalorder %s27_s12, %s27_s12 }
   0xe   :  { %p88_p5 = scmp.ne.s32.totalorder %s27_s12, %s87_s16  ;;  %p93_p7 = scmp.lt.s32.totalorder %s87_s16, %s87_s16 }
  0x10   :  { %p94_p8 = por %p93_p7, %p92_p6 }
  0x12   :  { %p95_p9 = pnand %p94_p8, %p88_p5 }
  0x14   :  { %98 = shalt.err (!%p95_p9)
}
  0x15   :  { %29 = dma.hbm_to_vmem [thread:$0]  %s153_s1, 64, %s27_s12, [#allocation6]  }
  0x16   :  { %119 = dma.done.wait [#allocation3], 64  }
  0x17   :  { %120 = vsyncadd [#allocation3], 4294967232 }
  0x18   :  { %121 = dma.done.wait [#allocation6], 64  }
  0x19   :  { %122 = vsyncadd [#allocation6], 4294967232  ;;  %s127_s19 = smov [#allocation7]   ;;  %v36_v0 = vld [vmem:[#allocation2] sm:$0xf] }
  0x1a   :  { %s46_s20 = sshll.u32 %s127_s19, 4  ;;  %v37_v1 = vld [vmem:[#allocation5] sm:$0xf]  ;;  %s47_s20 = int_to_ptr.vmem [resolvable:$true] %s46_s20 }
  0x1b   :  { %v38_v2 = vadd.f32 %v37_v1, %v36_v0  ;;  %s99_s0 = scalar_lea.vmem %s47_s20, 64  ;;  %p104_p11 = scmp.lt.s32.totalorder %s47_s20, %s47_s20 }
  0x1c   :  { %p100_p10 = scmp.ne.s32.totalorder %s47_s20, %s99_s0  ;;  %p105_p12 = scmp.lt.s32.totalorder %s99_s0, %s99_s0 }
  0x1d   :  { %39 = vst [vmem:[#allocation7] sm:$0xf] %v38_v2 }
  0x1e   :  { %p106_p13 = por %p105_p12, %p104_p11 }
  0x20   :  { %p107_p0 = pnand %p106_p13, %p100_p10 }
  0x22   :  { %110 = shalt.err (!%p107_p0)
}
  0x23   :  { %49 = dma.vmem_to_hbm [thread:$0]  %s47_s20, 64, %s154_s2, [#allocation4]  }
  0x24   :  { %123 = dma.done.wait [#allocation4], 64  }
  0x25   :  { %124 = vsyncadd [#allocation4], 4294967232 }
  0x26   :  { %53 = vsyncpa [#allocation3], 1 }
  0x27   :  { %54 = vsyncpa [#allocation6], 1 }
  0x28   :  { %55 = vsyncpa [#allocation4], 1 }

</bundles_post_ra>
